<compile_context>
chip_gen: v7x
topology: tpu7x:2x2x1
jax: 0.10.0
libtpu: 0.0.40
codegen_flags: <defaults>
</compile_context>

<pallas_src>
import functools
import math

import jax
import jax.numpy as jnp
from jax.experimental import pallas as pl
from jax.experimental.pallas import tpu as pltpu

# ---------------------------------------------------------------------------
# Model configuration (small shapes for the self-test; wrapper is shape-generic)
# ---------------------------------------------------------------------------
D_MODEL = 32
D_FF = 128


def _round_up(x, m):
    return ((x + m - 1) // m) * m


def _pick_hidden_tile(d_ff):
    """Largest of (512, 256, 128) dividing d_ff, else the full hidden dim."""
    for cand in (512, 256, 128):
        if d_ff % cand == 0:
            return cand
    return d_ff


def _ffn_kernel(x_ref, w1_ref, b1_ref, w2_ref, b2_ref, o_ref, acc_ref):
    """Fused FFN row-tile with the hidden dim tiled on grid axis 1.

    x_ref:  (tm, d_model)   bf16 (or compute dtype)
    w1_ref: (d_model, tk)   bf16
    b1_ref: (1, tk)         f32
    w2_ref: (tk, d_model)   bf16
    b2_ref: (1, d_model)    f32
    o_ref:  (tm, d_model)   x.dtype
    acc_ref:(tm, d_model)   f32 scratch accumulator
    """
    k = pl.program_id(1)

    @pl.when(k == 0)
    def _():
        acc_ref[...] = jnp.zeros_like(acc_ref)

    # Linear 1 slice (MXU, bf16 operands, f32 accumulate) + bias + ReLU.
    h = jnp.dot(x_ref[...], w1_ref[...], preferred_element_type=jnp.float32)
    h = jnp.maximum(h + b1_ref[...], 0.0)                       # (tm, tk) f32

    # TODO(synk): dropout is identity in eval/inference mode; training-mode
    # stochastic dropout (pltpu.prng_*) intentionally omitted.

    # Linear 2 partial contribution along the hidden dim, f32 accumulation.
    acc_ref[...] += jnp.dot(h.astype(w2_ref.dtype), w2_ref[...],
                            preferred_element_type=jnp.float32)

    @pl.when(k == pl.num_programs(1) - 1)
    def _():
        o_ref[...] = (acc_ref[...] + b2_ref[...]).astype(o_ref.dtype)


@functools.partial(jax.jit, static_argnames=("tile_m", "compute_dtype"))
def pointerwise_feedforward(x, params, tile_m=512, compute_dtype=jnp.bfloat16):
    """x: (..., d_model) -> (..., d_model), same dtype as x."""
    w1, b1, w2, b2 = params
    d_model = x.shape[-1]
    d_ff = w1.shape[1]
    assert w1.shape == (d_model, d_ff)
    assert w2.shape == (d_ff, d_model)

    batch_dims = x.shape[:-1]
    M = math.prod(batch_dims) if batch_dims else 1
    out_dtype = x.dtype

    # Cast matmul operands once in the wrapper (bf16 MXU path, f32 accum).
    x2 = x.reshape(M, d_model).astype(compute_dtype)
    w1c = w1.astype(compute_dtype)
    w2c = w2.astype(compute_dtype)
    b1c = b1.astype(jnp.float32)
    b2c = b2.astype(jnp.float32)

    # Row tile: big (amortize per-step overhead, fill MXU M-dim), clamped for
    # tiny inputs, sublane-aligned.  Ragged last block is handled by Pallas
    # (reads of the over-hang rows are garbage but their writes are clipped).
    tm = min(tile_m, _round_up(M, 8))
    # Hidden tile must divide d_ff exactly (reduction-axis blocks may not be
    # ragged, or garbage would be summed into valid rows).
    tk = _pick_hidden_tile(d_ff)

    grid = (pl.cdiv(M, tm), d_ff // tk)

    in_specs = [
        pl.BlockSpec((tm, d_model), lambda i, k: (i, 0)),   # x row tile
        pl.BlockSpec((d_model, tk), lambda i, k: (0, k)),   # W1 hidden slice
        pl.BlockSpec((1, tk), lambda i, k: (0, k)),         # b1 hidden slice
        pl.BlockSpec((tk, d_model), lambda i, k: (k, 0)),   # W2 hidden slice
        pl.BlockSpec((1, d_model), lambda i, k: (0, 0)),    # b2
    ]
    out_spec = pl.BlockSpec((tm, d_model), lambda i, k: (i, 0))

    # VMEM budget: double-buffered in/out blocks + f32 accumulator + headroom.
    c_size = jnp.dtype(compute_dtype).itemsize
    o_size = jnp.dtype(out_dtype).itemsize
    est = 2 * (tm * d_model * c_size          # x tile
               + d_model * tk * c_size        # W1 block
               + tk * 4                       # b1 block
               + tk * d_model * c_size        # W2 block
               + d_model * 4                  # b2
               + tm * d_model * o_size)       # out tile
    est += tm * d_model * 4                   # accumulator scratch
    vmem_limit = int(min(64 * 1024 * 1024, est + 16 * 1024 * 1024))

    cost = pl.CostEstimate(
        flops=4 * M * d_model * d_ff,
        transcendentals=0,
        bytes_accessed=(M * d_model * c_size            # x
                        + d_model * d_ff * c_size       # W1
                        + d_ff * 4                      # b1
                        + d_ff * d_model * c_size       # W2
                        + d_model * 4                   # b2
                        + M * d_model * o_size),        # y
    )

    out = pl.pallas_call(
        _ffn_kernel,
        out_shape=jax.ShapeDtypeStruct((M, d_model), out_dtype),
        grid_spec=pltpu.PrefetchScalarGridSpec(
            num_scalar_prefetch=0,
            grid=grid,
            in_specs=in_specs,
            out_specs=out_spec,
            scratch_shapes=[pltpu.VMEM((tm, d_model), jnp.float32)],
        ),
        compiler_params=pltpu.CompilerParams(
            dimension_semantics=("parallel", "arbitrary"),
            vmem_limit_bytes=vmem_limit,
        ),
        cost_estimate=cost,
    )(x2, w1c, b1c, w2c, b2c)

    return out.reshape(*batch_dims, d_model)


def init_params(key, d_model=D_MODEL, d_ff=D_FF):
    """Deterministic synthetic parameters (PyTorch-Linear-like init scales)."""
    ks = jax.random.split(key, 4)

    def linear(kw, kb, fan_in, fan_out):
        bound = 1.0 / jnp.sqrt(fan_in)
        w = jax.random.uniform(kw, (fan_in, fan_out), jnp.float32, -bound, bound)
        b = jax.random.uniform(kb, (1, fan_out), jnp.float32, -bound, bound)
        return w, b

    w1, b1 = linear(ks[0], ks[1], d_model, d_ff)
    w2, b2 = linear(ks[2], ks[3], d_ff, d_model)
    return (w1, b1, w2, b2)


def reference(x, params, compute_dtype=jnp.float32):
    """Pure-JAX reference of the PyTorch forward pass (eval mode)."""
    w1, b1, w2, b2 = params
    xc = x.astype(compute_dtype)
    h = jnp.dot(xc, w1.astype(compute_dtype),
                preferred_element_type=jnp.float32) + b1
    h = jnp.maximum(h, 0.0)
    y = jnp.dot(h.astype(compute_dtype), w2.astype(compute_dtype),
                preferred_element_type=jnp.float32) + b2
    return y.astype(x.dtype)


if __name__ == "__main__":
    key = jax.random.PRNGKey(0)
    k_param, k_x = jax.random.split(key)

    params = init_params(k_param)

    B, S = 2, 8
    x = jax.random.normal(k_x, (B, S, D_MODEL), jnp.float32)

    out = pointerwise_feedforward(x, params)
    out = jax.block_until_ready(out)

    assert out.shape == (B, S, D_MODEL)
    assert out.dtype == x.dtype

    # Tight check against a reference using the same bf16-operand / f32-accum
    # math; loose sanity check against the pure-f32 reference.
    ref_bf16 = reference(x, params, compute_dtype=jnp.bfloat16)
    ref_f32 = reference(x, params, compute_dtype=jnp.float32)
    assert jnp.allclose(out, ref_bf16, atol=2e-3, rtol=2e-3), "mismatch vs bf16 reference"
    assert jnp.allclose(out, ref_f32, atol=5e-2, rtol=5e-2), "mismatch vs f32 reference"

    print("KERNEL_OK")
</pallas_src>

<mosaic_0001>
module attributes {stable_mosaic.version = 11 : i64} {
  func.func @_ffn_kernel(%arg0: i32, %arg1: i32, %arg2: memref<16x32xbf16, #tpu.memory_space<vmem>>, %arg3: memref<32x128xbf16, #tpu.memory_space<vmem>>, %arg4: memref<1x128xf32, #tpu.memory_space<vmem>>, %arg5: memref<128x32xbf16, #tpu.memory_space<vmem>>, %arg6: memref<1x32xf32, #tpu.memory_space<vmem>>, %arg7: memref<16x32xf32, #tpu.memory_space<vmem>>, %arg8: memref<16x32xf32, #tpu.memory_space<vmem>>) attributes {dimension_semantics = [#tpu.dimension_semantics<parallel>, #tpu.dimension_semantics<arbitrary>], iteration_bounds = array<i64: 1, 1>, scalar_prefetch = 0 : i64, scratch_operands = 1 : i64, tpu.core_type = #tpu.core_type<tc>, window_params = [{transform_indices = @transform_0, window_bounds = array<i64: 16, 32>}, {transform_indices = @transform_1, window_bounds = array<i64: 32, 128>}, {transform_indices = @transform_2, window_bounds = array<i64: 1, 128>}, {transform_indices = @transform_3, window_bounds = array<i64: 128, 32>}, {pipeline_mode = #tpu.pipeline_mode<synchronous>, transform_indices = @transform_4, window_bounds = array<i64: 1, 32>}, {transform_indices = @transform_5, window_bounds = array<i64: 16, 32>}]} {
    %c0_i32 = arith.constant 0 : i32
    %0 = arith.cmpi eq, %arg1, %c0_i32 : i32
    %1 = arith.extui %0 : i1 to i32
    %c0_i32_0 = arith.constant 0 : i32
    %2 = arith.cmpi ne, %1, %c0_i32_0 : i32
    scf.if %2 {
      %cst_16 = arith.constant 0.000000e+00 : f32
      %20 = vector.broadcast %cst_16 : f32 to vector<16x32xf32>
      %c0_17 = arith.constant 0 : index
      %c0_18 = arith.constant 0 : index
      %21 = vector.load %arg8[%c0_17, %c0_18] : memref<16x32xf32, #tpu.memory_space<vmem>>, vector<16x32xf32>
      tpu.vector_store %arg8[%c0_17, %c0_18], %20 {strides = array<i32>} : memref<16x32xf32, #tpu.memory_space<vmem>>, vector<16x32xf32>,
    } else {
    }
    %c0 = arith.constant 0 : index
    %c0_1 = arith.constant 0 : index
    %3 = vector.load %arg2[%c0, %c0_1] : memref<16x32xbf16, #tpu.memory_space<vmem>>, vector<16x32xbf16>
    %c0_2 = arith.constant 0 : index
    %c0_3 = arith.constant 0 : index
    %4 = vector.load %arg3[%c0_2, %c0_3] : memref<32x128xbf16, #tpu.memory_space<vmem>>, vector<32x128xbf16>
    %cst = arith.constant dense<0.000000e+00> : vector<16x128xf32>
    %5 = tpu.matmul %3, %4, %cst {dimension_numbers = #tpu.dot_dimension_numbers<[1], [0], [0], [1], [0, 0, 1, 1], [], []>} : vector<16x32xbf16>, vector<32x128xbf16>, vector<16x128xf32> -> vector<16x128xf32>
    %c0_4 = arith.constant 0 : index
    %c0_5 = arith.constant 0 : index
    %6 = vector.load %arg4[%c0_4, %c0_5] : memref<1x128xf32, #tpu.memory_space<vmem>>, vector<1x128xf32>
    %7 = vector.broadcast %6 : vector<1x128xf32> to vector<16x128xf32>
    %8 = arith.addf %5, %7 : vector<16x128xf32>
    %cst_6 = arith.constant 0.000000e+00 : f32
    %9 = vector.broadcast %cst_6 : f32 to vector<16x128xf32>
    %10 = arith.maximumf %8, %9 : vector<16x128xf32>
    %c0_7 = arith.constant 0 : index
    %c0_8 = arith.constant 0 : index
    %11 = vector.load %arg8[%c0_7, %c0_8] : memref<16x32xf32, #tpu.memory_space<vmem>>, vector<16x32xf32>
    %12 = arith.truncf %10 : vector<16x128xf32> to vector<16x128xbf16>
    %c0_9 = arith.constant 0 : index
    %c0_10 = arith.constant 0 : index
    %13 = vector.load %arg5[%c0_9, %c0_10] : memref<128x32xbf16, #tpu.memory_space<vmem>>, vector<128x32xbf16>
    %cst_11 = arith.constant dense<0.000000e+00> : vector<16x32xf32>
    %14 = tpu.matmul %12, %13, %cst_11 {dimension_numbers = #tpu.dot_dimension_numbers<[1], [0], [0], [1], [0, 0, 1, 1], [], []>} : vector<16x128xbf16>, vector<128x32xbf16>, vector<16x32xf32> -> vector<16x32xf32>
    %15 = arith.addf %11, %14 : vector<16x32xf32>
    %c0_12 = arith.constant 0 : index
    %c0_13 = arith.constant 0 : index
    %16 = vector.load %arg8[%c0_12, %c0_13] : memref<16x32xf32, #tpu.memory_space<vmem>>, vector<16x32xf32>
    tpu.vector_store %arg8[%c0_12, %c0_13], %15 {strides = array<i32>} : memref<16x32xf32, #tpu.memory_space<vmem>>, vector<16x32xf32>,
    %c0_i32_14 = arith.constant 0 : i32
    %17 = arith.cmpi eq, %arg1, %c0_i32_14 : i32
    %18 = arith.extui %17 : i1 to i32
    %c0_i32_15 = arith.constant 0 : i32
    %19 = arith.cmpi ne, %18, %c0_i32_15 : i32
    scf.if %19 {
      %c0_16 = arith.constant 0 : index
      %c0_17 = arith.constant 0 : index
      %20 = vector.load %arg8[%c0_16, %c0_17] : memref<16x32xf32, #tpu.memory_space<vmem>>, vector<16x32xf32>
      %c0_18 = arith.constant 0 : index
      %c0_19 = arith.constant 0 : index
      %21 = vector.load %arg6[%c0_18, %c0_19] : memref<1x32xf32, #tpu.memory_space<vmem>>, vector<1x32xf32>
      %22 = vector.broadcast %21 : vector<1x32xf32> to vector<16x32xf32>
      %23 = arith.addf %20, %22 : vector<16x32xf32>
      %c0_20 = arith.constant 0 : index
      %c0_21 = arith.constant 0 : index
      %24 = vector.load %arg7[%c0_20, %c0_21] : memref<16x32xf32, #tpu.memory_space<vmem>>, vector<16x32xf32>
      tpu.vector_store %arg7[%c0_20, %c0_21], %23 {strides = array<i32>} : memref<16x32xf32, #tpu.memory_space<vmem>>, vector<16x32xf32>,
    } else {
    }
    return
  }
  func.func @transform_0(%arg0: i32, %arg1: i32) -> (i32, i32) {
    %c0_i32 = arith.constant 0 : i32
    %c0_i32_0 = arith.constant 0 : i32
    return %arg0, %c0_i32 : i32, i32
  }
  func.func @transform_1(%arg0: i32, %arg1: i32) -> (i32, i32) {
    %c0_i32 = arith.constant 0 : i32
    %c0_i32_0 = arith.constant 0 : i32
    return %c0_i32, %arg1 : i32, i32
  }
  func.func @transform_2(%arg0: i32, %arg1: i32) -> (i32, i32) {
    %c0_i32 = arith.constant 0 : i32
    %c0_i32_0 = arith.constant 0 : i32
    return %c0_i32, %arg1 : i32, i32
  }
  func.func @transform_3(%arg0: i32, %arg1: i32) -> (i32, i32) {
    %c0_i32 = arith.constant 0 : i32
    %c0_i32_0 = arith.constant 0 : i32
    return %arg1, %c0_i32 : i32, i32
  }
  func.func @transform_4(%arg0: i32, %arg1: i32) -> (i32, i32) {
    %c0_i32 = arith.constant 0 : i32
    %c0_i32_0 = arith.constant 0 : i32
    %c0_i32_1 = arith.constant 0 : i32
    return %c0_i32, %c0_i32_0 : i32, i32
  }
  func.func @transform_5(%arg0: i32, %arg1: i32) -> (i32, i32) {
    %c0_i32 = arith.constant 0 : i32
    %c0_i32_0 = arith.constant 0 : i32
    return %arg0, %c0_i32 : i32, i32
  }
}

</mosaic_0001>

<bundles_post_ra>
// kernel: pointerwise_feedforward.1
= control target key start
LH: loop header
LB: loop body
LE: loop exit
PB: predicated region body
PF: predicated region fallthrough
CT: control target
= control target key end

     0   :  { %v344_v1 = vmov 0.0   ;;  %vm345_vm0 = vmmov 0   ;;  %vm26_vm1 = vcmask 261120   ;;  %s437_s0 = inlined_call_operand.vmem [shape: bf16[16,32], index: 0, kind: input, shape index: {}]   ;;  %s438_s1 = inlined_call_operand.vmem [shape: bf16[32,128], index: 1, kind: input, shape index: {}]   ;;  %s439_s2 = inlined_call_operand.vmem [shape: f32[1,128], index: 2, kind: input, shape index: {}]   ;;  %s440_s3 = inlined_call_operand.vmem [shape: bf16[128,32], index: 3, kind: input, shape index: {}]   ;;  %s441_s4 = inlined_call_operand.vmem [shape: f32[1,32], index: 4, kind: input, shape index: {}]   ;;  %s442_s5 = inlined_call_operand.hbm [shape: f32[16,32], index: 5, kind: output, shape index: {}]  }
   0x1   :  { %v309_v0 = vld [vmem:[%s438_s1] sm:$0xff]   ;;  %276 = vmatprep.subr.bf16.mxu0 %v344_v1  ;;  %284 = vmatprep.subr.bf16.mxu1 %v344_v1  ;;  %v310_v2 = vld [vmem:[%s438_s1 + $0x8] sm:$0xff]   ;;  %27 = vst.msk [vmem:[#allocation2] sm:$0xff] %vm26_vm1, %v344_v1  ;;  %28 = vst.msk [vmem:[#allocation2 + $0x8] sm:$0xff] %vm26_vm1, %v344_v1 }
   0x2   :  { %277 = vmatpush3.bf16.msra.mxu0 %v309_v0  ;;  %280 = vmatprep.mubr.msk.bf16.mxu0 %vm345_vm0, %v344_v1  ;;  %v312_v3 = vld [vmem:[%s440_s3] sm:$0xff]   ;;  %v313_v5 = vld [vmem:[%s440_s3 + $0x8] sm:$0xff]   ;;  %v314_v6 = vld [vmem:[%s440_s3 + $0x10] sm:$0xff]  }
   0x3   :  { %278 = vmatprep.subr.bf16.mxu0 %v344_v1  ;;  %300 = vmatprep.mubr.msk.bf16.mxu1 %vm345_vm0, %v344_v1  ;;  %v311_v4 = vld [vmem:[%s437_s0] sm:$0xff]  }
   0x4   :  { %285 = vmatpush3.bf16.msra.mxu1 %v312_v3 }
   0x5   :  { %286 = vmatprep.subr.bf16.mxu1 %v344_v1 }
   0x6   :  { %279 = vmatpush3.bf16.msra.mxu0 %v310_v2 }
   0x8   :  { %287 = vmatpush3.bf16.msra.mxu1 %v313_v5 }
   0x9   :  { %281 = vmatmul.mubr.msk.bf16.vlgmr.msra.gmra.mrb[0].mxu0 %vm26_vm1, %v311_v4  ;;  %288 = vmatprep.subr.bf16.mxu1 %v344_v1 }
   0xa   :  { %10 = vsyncpa [#allocation4], 0  ;;  %v315_v7 = vld [vmem:[%s440_s3 + $0x18] sm:$0xff]   ;;  %v316_v8 = vld [vmem:[%s440_s3 + $0x20] sm:$0xff]   ;;  %s346_s15 = smov [#allocation3]  }
   0xb   :  { %v317_v9 = vld [vmem:[%s440_s3 + $0x28] sm:$0xff]   ;;  %v318_v10 = vld [vmem:[%s440_s3 + $0x30] sm:$0xff]   ;;  %v319_v11 = vld [vmem:[%s440_s3 + $0x38] sm:$0xff]   ;;  %s239_s16 = sshll.u32 %s346_s15, 4  ;;  %s240_s16 = int_to_ptr.vmem [resolvable:$true] %s239_s16 }
   0xc   :  { %289 = vmatpush3.bf16.msra.mxu1 %v314_v6  ;;  %v250_v12 = vld [vmem:[%s439_s2] ss:$0 sm:$0xff]  ;;  %v107_v24 = vld [vmem:[#allocation2 + $0x8] sm:$0xff]  ;;  %s320_s17 = scalar_lea.vmem %s240_s16, 256  ;;  %p325_p1 = scmp.lt.s32.totalorder %s240_s16, %s240_s16 }
   0xd   :  { %290 = vmatprep.subr.bf16.mxu1 %v344_v1  ;;  %v106_v22 = vld [vmem:[#allocation2] sm:$0xff]  ;;  %p321_p0 = scmp.ne.s32.totalorder %s240_s16, %s320_s17  ;;  %p326_p2 = scmp.lt.s32.totalorder %s320_s17, %s320_s17 }
   0xe   :  { %v263_v30 = vld [vmem:[%s441_s4] ss:$0 sm:$0xff] }
   0xf   :  { %p327_p3 = por %p326_p2, %p325_p1 }
  0x10   :  { %291 = vmatpush3.bf16.msra.mxu1 %v315_v7 }
  0x11   :  { %292 = vmatprep.subr.bf16.mxu1 %v344_v1  ;;  %p328_p4 = pnand %p327_p3, %p321_p0 }
  0x14   :  { %293 = vmatpush3.bf16.msra.mxu1 %v316_v8 }
  0x15   :  { %294 = vmatprep.subr.bf16.mxu1 %v344_v1 }
  0x18   :  { %295 = vmatpush3.bf16.msra.mxu1 %v317_v9 }
  0x19   :  { %296 = vmatprep.subr.bf16.mxu1 %v344_v1 }
  0x1c   :  { %297 = vmatpush3.bf16.msra.mxu1 %v318_v10 }
  0x1d   :  { %298 = vmatprep.subr.bf16.mxu1 %v344_v1 }
  0x20   :  { %299 = vmatpush3.bf16.msra.mxu1 %v319_v11 }
  0xdc   :  { %v97_v13 = vpop.f32.mrb[0].mxu0 }
  0xdd   :  { %v98_v14 = vadd.f32 %v250_v12, %v97_v13  ;;  %v282_v15 = vpop.f32.mrb[1].mxu0 }
  0xde   :  { %v100_v16 = vpop.f32.mrb[2].mxu0 }
  0xdf   :  { %v101_v17 = vadd.f32 %v250_v12, %v100_v16  ;;  %v283_v18 = vpop.f32.mrb[3].mxu0  ;;  %v104_v19 = vmax.f32 %v98_v14, 0.0 }
  0xe1   :  { %v105_v20 = vmax.f32 %v101_v17, 0.0 }
  0xe3   :  { %v108_v21 = vpack.c.bf16 %v105_v20, %v104_v19 }
  0xe5   :  { %301 = vmatmul.mubr.bf16.vlgmr.msra.gmra.mrb[0].mxu1 %v108_v21 }
 0x1b8   :  { %v207_v23 = vpop.f32.mrb[0].mxu1 }
 0x1b9   :  { %v214_v25 = vadd.f32 %v207_v23, %v106_v22  ;;  %v302_v26 = vpop.f32.mrb[1].mxu1 }
 0x1ba   :  { %v210_v27 = vpop.f32.mrb[2].mxu1 }
 0x1bb   :  { %216 = vst.msk [vmem:[#allocation2] sm:$0xff] %vm26_vm1, %v214_v25  ;;  %v215_v28 = vadd.f32 %v210_v27, %v107_v24  ;;  %v303_v29 = vpop.f32.mrb[3].mxu1 }
 0x1bd   :  { %217 = vst.msk [vmem:[#allocation2 + $0x8] sm:$0xff] %vm26_vm1, %v215_v28 }
 0x1c2   :  { %v221_v31 = vld [vmem:[#allocation2] sm:$0xff] }
 0x1c3   :  { %v230_v32 = vadd.f32 %v263_v30, %v221_v31 }
 0x1c4   :  { %v222_v33 = vld [vmem:[#allocation2 + $0x8] sm:$0xff] }
 0x1c5   :  { %v231_v34 = vadd.f32 %v263_v30, %v222_v33  ;;  %232 = vst.msk [vmem:[#allocation3] sm:$0xff] %vm26_vm1, %v230_v32 }
 0x1c7   :  { %233 = vst.msk [vmem:[#allocation3 + $0x8] sm:$0xff] %vm26_vm1, %v231_v34 }
 0x1c8   :  { %331 = shalt.err (!%p328_p4)
}
 0x1c9   :  { %s332_s19 = scalar_lea.hbm %s442_s5, 256 }
 0x1ca   :  { %p333_p5 = scmp.ne.s32.totalorder %s442_s5, %s332_s19  ;;  %p336_p6 = scmp.lt.u32.totalorder %s332_s19, %s442_s5 }
 0x1cc   :  { %p338_p7 = pnand %p336_p6, %p333_p5 }
 0x1ce   :  { %341 = shalt.err (!%p338_p7)
}
 0x1cf   :  { %s347_s24 = smov 128   ;;  %s348_s25 = smov 8  }
 0x1d0   :  { %245 = dma.vmem_to_hbm [thread:$0]  %s240_s16, 256, %s442_s5, [#allocation4], %s347_s24, %s347_s24, %s348_s25  }
 0x1d1   :  { %342 = dma.done.wait [#allocation4], 256  }
 0x1d2   :  { %343 = vsyncadd [#allocation4], 4294967040 }
 0x1d3   :  { %249 = vsyncpa [#allocation4], 1 }

</bundles_post_ra>
